<compile_context>
chip_gen: v5e
topology: v5e:2x2
jax: 0.10.0
libtpu: 0.0.40
codegen_flags: <defaults>
</compile_context>

<pallas_src>
import functools

import jax
import jax.numpy as jnp
from jax.experimental import pallas as pl
from jax.experimental.pallas import tpu as pltpu

block_size = 128
dropout = 0.4
n_embd = 184


def head_kernel(x_ref, wqkv_ref, o_ref, *, compute_dtype, approx_softmax):
    # x_ref: (b_blk, T, C), wqkv_ref: (C, 3H) with the attention scale pre-folded into the
    # Q columns, o_ref: (b_blk, T, H)
    b_blk, T, C = x_ref.shape
    H = o_ref.shape[-1]

    # Fused QKV projection: one MXU matmul with N = 3H, rows = b_blk * T.
    x2d = x_ref[...].reshape(b_blk * T, C).astype(compute_dtype)
    w = wqkv_ref[...].astype(compute_dtype)
    qkv = jnp.dot(x2d, w, preferred_element_type=jnp.float32)      # (b_blk*T, 3H) f32 acc
    qkv = qkv.reshape(b_blk, T, 3 * H)

    q = qkv[..., 0 * H:1 * H]        # already scaled by C**-0.5 (folded into the weight)
    k = qkv[..., 1 * H:2 * H]
    v = qkv[..., 2 * H:3 * H]

    # Batched q @ k^T (contract head dim, batch over b_blk) -- no explicit transpose.
    wei = jax.lax.dot_general(
        q.astype(compute_dtype), k.astype(compute_dtype),
        dimension_numbers=(((2,), (2,)), ((0,), (0,))),
        preferred_element_type=jnp.float32)                        # (b_blk, T, T) f32

    # Causal (lower-triangular) mask. Diagonal is always unmasked, so -inf is safe here.
    row = jax.lax.broadcasted_iota(jnp.int32, (T, T), 0)
    col = jax.lax.broadcasted_iota(jnp.int32, (T, T), 1)
    wei = jnp.where((col <= row)[None, :, :], wei, -jnp.inf)

    # Numerically stable softmax in f32.
    m = jnp.max(wei, axis=-1, keepdims=True)
    e = jnp.exp(wei - m)
    denom = jnp.sum(e, axis=-1, keepdims=True)
    if approx_softmax:
        # EUP reciprocal: separate issue slot, effectively free; used on the fast path only.
        p = e * pl.reciprocal(denom, approx=True)
    else:
        p = e / denom

    # dropout: eval mode -> identity.

    # Batched p @ v.
    out = jax.lax.dot_general(
        p.astype(compute_dtype), v.astype(compute_dtype),
        dimension_numbers=(((2,), (1,)), ((0,), (0,))),
        preferred_element_type=jnp.float32)                        # (b_blk, T, H) f32
    o_ref[...] = out.astype(o_ref.dtype)


def head_forward(x, Wq, Wk, Wv, *, b_blk=None, use_bf16=False):
    """x: (B, T, C) float32; Wq/Wk/Wv: (head_size, C) float32 (PyTorch nn.Linear layout).

    Computes softmax(causal_mask(q @ k^T * C**-0.5)) @ v with q/k/v = x @ W{q,k,v}^T
    (eval-mode dropout == identity), matching `Head.forward`.
    """
    B, T, C = x.shape
    H = Wq.shape[0]

    # Fused (C, 3H) weight; fold the attention scale into the query columns (free at runtime).
    scale = jnp.float32(C) ** jnp.float32(-0.5)
    w_qkv = jnp.concatenate([Wq.T * scale, Wk.T, Wv.T], axis=1)    # (C, 3H)

    if b_blk is None:
        # Stack 2 sequences per step when the batch allows it (fills the 256-row MXU on
        # v6e/v7x and amortizes per-step overhead) while keeping >=2 parallel grid steps
        # so both v7x TensorCores stay busy.
        b_blk = 2 if (B % 2 == 0 and B >= 4) else 1
    if B % b_blk != 0:
        b_blk = 1

    compute_dtype = jnp.bfloat16 if use_bf16 else jnp.float32
    kernel = functools.partial(head_kernel, compute_dtype=compute_dtype,
                               approx_softmax=use_bf16)

    return pl.pallas_call(
        kernel,
        out_shape=jax.ShapeDtypeStruct((B, T, H), x.dtype),
        grid_spec=pltpu.PrefetchScalarGridSpec(
            num_scalar_prefetch=0,
            grid=(B // b_blk,),
            in_specs=[
                pl.BlockSpec((b_blk, T, C), lambda b: (b, 0, 0)),
                pl.BlockSpec((C, 3 * H), lambda b: (0, 0)),
            ],
            out_specs=pl.BlockSpec((b_blk, T, H), lambda b: (b, 0, 0)),
        ),
        compiler_params=pltpu.CompilerParams(
            dimension_semantics=("parallel",)),
    )(x, w_qkv)


if __name__ == "__main__":
    # Full-precision f32 matmuls for both the reference and the kernel's f32 path, so they
    # agree closely (TPU DEFAULT precision uses bf16 operand passes and would not).
    jax.config.update("jax_default_matmul_precision", "highest")

    key = jax.random.PRNGKey(0)
    B, T, C = 2, 8, n_embd          # T <= block_size (128)
    head_size = 32

    k_x, k_k, k_q, k_v = jax.random.split(key, 4)
    x = jax.random.normal(k_x, (B, T, C), dtype=jnp.float32)

    # nn.Linear(n_embd, head_size, bias=False): weight shape (head_size, n_embd), y = x @ W^T.
    bound = 1.0 / (C ** 0.5)
    Wk = jax.random.uniform(k_k, (head_size, C), jnp.float32, -bound, bound)
    Wq = jax.random.uniform(k_q, (head_size, C), jnp.float32, -bound, bound)
    Wv = jax.random.uniform(k_v, (head_size, C), jnp.float32, -bound, bound)

    # Pure-JAX reference (eval-mode dropout = identity).
    k_ref = x @ Wk.T
    q_ref = x @ Wq.T
    v_ref = x @ Wv.T
    wei = (q_ref @ jnp.swapaxes(k_ref, -2, -1)) * (C ** -0.5)
    mask = jnp.tril(jnp.ones((T, T), dtype=bool))
    wei = jnp.where(mask, wei, -jnp.inf)
    wei = jax.nn.softmax(wei, axis=-1)
    ref = wei @ v_ref

    # f32 MXU operands (reference-accuracy path).
    out_f32 = jax.block_until_ready(head_forward(x, Wq, Wk, Wv, use_bf16=False))
    assert out_f32.shape == (B, T, head_size)
    assert jnp.allclose(out_f32, ref, atol=2e-2, rtol=2e-2), (
        "f32 path mismatch: max abs err "
        f"{float(jnp.max(jnp.abs(out_f32 - ref)))}")

    # bf16 MXU operands (recommended on v6e/v7x); softmax stays f32, looser tolerance.
    out_bf16 = jax.block_until_ready(head_forward(x, Wq, Wk, Wv, use_bf16=True))
    assert out_bf16.shape == (B, T, head_size)
    assert jnp.allclose(out_bf16, ref, atol=5e-2, rtol=5e-2), (
        "bf16 path mismatch: max abs err "
        f"{float(jnp.max(jnp.abs(out_bf16 - ref)))}")

    print("KERNEL_OK")
</pallas_src>

<mosaic_0001>
module attributes {stable_mosaic.version = 11 : i64} {
  func.func @head_kernel(%arg0: i32, %arg1: memref<1x8x184xf32, #tpu.memory_space<vmem>>, %arg2: memref<184x96xf32, #tpu.memory_space<vmem>>, %arg3: memref<1x8x32xf32, #tpu.memory_space<vmem>>) attributes {dimension_semantics = [#tpu.dimension_semantics<parallel>], iteration_bounds = array<i64: 2>, scalar_prefetch = 0 : i64, scratch_operands = 0 : i64, tpu.core_type = #tpu.core_type<tc>, window_params = [{transform_indices = @transform_0, window_bounds = array<i64: 1, 8, 184>}, {pipeline_mode = #tpu.pipeline_mode<synchronous>, transform_indices = @transform_1, window_bounds = array<i64: 184, 96>}, {transform_indices = @transform_2, window_bounds = array<i64: 1, 8, 32>}]} {
    %c0 = arith.constant 0 : index
    %c0_0 = arith.constant 0 : index
    %c0_1 = arith.constant 0 : index
    %0 = vector.load %arg1[%c0, %c0_0, %c0_1] : memref<1x8x184xf32, #tpu.memory_space<vmem>>, vector<1x8x184xf32>
    %1 = vector.shape_cast %0 : vector<1x8x184xf32> to vector<8x184xf32>
    %c0_2 = arith.constant 0 : index
    %c0_3 = arith.constant 0 : index
    %2 = vector.load %arg2[%c0_2, %c0_3] : memref<184x96xf32, #tpu.memory_space<vmem>>, vector<184x96xf32>
    %cst = arith.constant dense<0.000000e+00> : vector<8x96xf32>
    %3 = tpu.matmul %1, %2, %cst {dimension_numbers = #tpu.dot_dimension_numbers<[1], [0], [0], [1], [0, 0, 1, 1], [], []>, precision = #tpu.contract_precision<fp32>} : vector<8x184xf32>, vector<184x96xf32>, vector<8x96xf32> -> vector<8x96xf32>
    %4 = vector.shape_cast %3 : vector<8x96xf32> to vector<1x8x96xf32>
    %5 = vector.extract_strided_slice %4 {offsets = [0, 0, 0], sizes = [1, 8, 32], strides = [1, 1, 1]} : vector<1x8x96xf32> to vector<1x8x32xf32>
    %6 = vector.extract_strided_slice %4 {offsets = [0, 0, 32], sizes = [1, 8, 32], strides = [1, 1, 1]} : vector<1x8x96xf32> to vector<1x8x32xf32>
    %7 = vector.extract_strided_slice %4 {offsets = [0, 0, 64], sizes = [1, 8, 32], strides = [1, 1, 1]} : vector<1x8x96xf32> to vector<1x8x32xf32>
    %cst_4 = arith.constant dense<0.000000e+00> : vector<1x8x8xf32>
    %8 = tpu.matmul %5, %6, %cst_4 {dimension_numbers = #tpu.dot_dimension_numbers<[2], [2], [1], [1], [0, 0, 0, 1, 1, 1], [0], [0]>, precision = #tpu.contract_precision<fp32>} : vector<1x8x32xf32>, vector<1x8x32xf32>, vector<1x8x8xf32> -> vector<1x8x8xf32>
    %9 = tpu.iota {dimensions = array<i32: 0>} : vector<8x8xi32>
    %10 = tpu.iota {dimensions = array<i32: 1>} : vector<8x8xi32>
    %11 = arith.cmpi sle, %10, %9 : vector<8x8xi32>
    %12 = vector.shape_cast %11 : vector<8x8xi1> to vector<1x8x8xi1>
    %cst_5 = arith.constant 0xFF800000 : f32
    %13 = vector.broadcast %cst_5 : f32 to vector<1x8x8xf32>
    %14 = arith.select %12, %8, %13 : vector<1x8x8xi1>, vector<1x8x8xf32>
    %cst_6 = arith.constant dense<0xFF800000> : vector<1x8xf32>
    %15 = vector.multi_reduction <maximumf>, %14, %cst_6 [2] : vector<1x8x8xf32> to vector<1x8xf32>
    %16 = vector.shape_cast %15 : vector<1x8xf32> to vector<1x8x1xf32>
    %17 = vector.broadcast %16 : vector<1x8x1xf32> to vector<1x8x8xf32>
    %18 = arith.subf %14, %17 : vector<1x8x8xf32>
    %19 = math.exp %18 : vector<1x8x8xf32>
    %cst_7 = arith.constant dense<0.000000e+00> : vector<1x8xf32>
    %20 = vector.multi_reduction <add>, %19, %cst_7 [2] : vector<1x8x8xf32> to vector<1x8xf32>
    %21 = vector.shape_cast %20 : vector<1x8xf32> to vector<1x8x1xf32>
    %22 = vector.broadcast %21 : vector<1x8x1xf32> to vector<1x8x8xf32>
    %23 = arith.divf %19, %22 : vector<1x8x8xf32>
    %cst_8 = arith.constant dense<0.000000e+00> : vector<1x8x32xf32>
    %24 = tpu.matmul %23, %7, %cst_8 {dimension_numbers = #tpu.dot_dimension_numbers<[2], [1], [1], [2], [0, 0, 0, 1, 1, 2], [0], [0]>, precision = #tpu.contract_precision<fp32>} : vector<1x8x8xf32>, vector<1x8x32xf32>, vector<1x8x32xf32> -> vector<1x8x32xf32>
    %c0_9 = arith.constant 0 : index
    %c0_10 = arith.constant 0 : index
    %c0_11 = arith.constant 0 : index
    %25 = vector.load %arg3[%c0_9, %c0_10, %c0_11] : memref<1x8x32xf32, #tpu.memory_space<vmem>>, vector<1x8x32xf32>
    tpu.vector_store %arg3[%c0_9, %c0_10, %c0_11], %24 {strides = array<i32>} : memref<1x8x32xf32, #tpu.memory_space<vmem>>, vector<1x8x32xf32>,
    return
  }
  func.func @transform_0(%arg0: i32) -> (i32, i32, i32) {
    %c0_i32 = arith.constant 0 : i32
    %c0_i32_0 = arith.constant 0 : i32
    %c0_i32_1 = arith.constant 0 : i32
    return %arg0, %c0_i32, %c0_i32_0 : i32, i32, i32
  }
  func.func @transform_1(%arg0: i32) -> (i32, i32) {
    %c0_i32 = arith.constant 0 : i32
    %c0_i32_0 = arith.constant 0 : i32
    %c0_i32_1 = arith.constant 0 : i32
    return %c0_i32, %c0_i32_0 : i32, i32
  }
  func.func @transform_2(%arg0: i32) -> (i32, i32, i32) {
    %c0_i32 = arith.constant 0 : i32
    %c0_i32_0 = arith.constant 0 : i32
    %c0_i32_1 = arith.constant 0 : i32
    return %arg0, %c0_i32, %c0_i32_0 : i32, i32, i32
  }
}

</mosaic_0001>

<bundles_post_ra>
// kernel: tpu_custom_call.1
= control target key start
LH: loop header
LB: loop body
LE: loop exit
PB: predicated region body
PF: predicated region fallthrough
CT: control target
= control target key end

     0   :  { %7 = vsyncpa [#allocation3], 0  ;;  %s1944_s0 = inlined_call_operand.hbm [shape: f32[2,8,184], index: 0, kind: input, shape index: {}]   ;;  %s1945_s1 = inlined_call_operand.hbm [shape: f32[184,96], index: 1, kind: input, shape index: {}]   ;;  %s1946_s2 = inlined_call_operand.hbm [shape: f32[2,8,32], index: 2, kind: output, shape index: {}]  }
   0x1   :  { %9 = vsyncpa [#allocation3 + $0x1], 0 }
   0x2   :  { %10 = vsyncpa [#allocation6], 0 }
   0x3   :  { %11 = vsyncpa [#allocation4], 0 }
   0x4   :  { %13 = vsyncpa [#allocation4 + $0x1], 0  ;;  %s1440_s9 = smov 0   ;;  %s1442_s10 = smov 0  }
   0x5   :  { %s1444_s11 = smov 0   ;;  %s1446_s12 = smov 0  }
   0x6 LB: > { %s108_s15 = sshll.u32 %s1945_s1, 4  ;;  %s1464_s16 = sadd.s32 4294967295, %s1418_s12   ;;  %s1418_s12 = sphi %s1446_s12, %s1984_s12   ;;  %s1414_s11 = sphi %s1444_s11, %s1983_s11   ;;  %s1410_s10 = sphi %s1442_s10, %s1982_s10   ;;  %s1406_s9 = sphi %s1440_s9, %s1981_s9   ;;  %s109_s15 = int_to_ptr.hbm [resolvable:$true] %s108_s15 }
   0x7   : > { %p1208_p0 = scmp.ge.s32.totalorder %s1418_s12, 1  ;;  %p40_p1 = scmp.eq.s32.totalorder %s1464_s16, 0 }
   0x8   : > { %p97_p2 = scmp.lt.s32.totalorder %s1418_s12, 3  ;;  %s1420_s18 = smov [#allocation5]  }
   0x9   : > { %s110_s19 = sshll.u32 %s1420_s18, 4  ;;  %s1421_s20 = smov 128   ;;  %s111_s19 = int_to_ptr.vmem [resolvable:$true] %s110_s19 }
   0xa   : > { %p1469_p3 = pnand %p1208_p0, %p97_p2  ;;  %s1422_s21 = smov 8  }
   0xb   : > { %s1207_s22 = sadd.s32 4294967294, %s1418_s12   ;;  %s1480_s23 = sadd.s32 1, %s1418_s12  }
   0xc   : > { %p1231_p4 = pneg %p1469_p3  ;;  %s26_s24 = sadd.s32 1, %s1414_s11 }
   0xd   : > { %s23_s25 = ssub.s32 %s1418_s12, %s1480_s23  ;;  %p33_p7 = scmp.ne.s32.totalorder %s1414_s11, %s1410_s10 }
   0xe   : > { %p1232_p6 = pnand %p1231_p4, %p40_p1  ;;  %p24_p8 = scmp.eq.s32.totalorder %s23_s25, 0 }
   0xf   : > { %p34_p9 = scmp.eq.s32.totalorder %s1418_s12, 0  ;;  %p39_p10 = scmp.ne.s32.totalorder %s1410_s10, %s1406_s9 }
  0x10   : > { %1234 = dma.hbm_to_vmem [thread:$0]  (!%p1232_p6), %s109_s15, 2944, %s111_s19, [#allocation6], %s1421_s20, %s1421_s20, %s1422_s21  }
  0x11   : > { %p84_p11 = scmp.eq.s32.totalorder %s1464_s16, 1  ;;  %p1496_p12 = por %p40_p1, %p39_p10 }
  0x12   : > { %s1492_s26 = scalar_select %p24_p8, %s1414_s11, %s26_s24  }
  0x13   : > { %p1500_p13 = por %p84_p11, %p33_p7  ;;  %p90_p0 = scmp.eq.s32.totalorder %s1207_s22, 1 }
  0x14   : > { %p35_p2 = por %p34_p9, %p33_p7  ;;  %s124_s29 = sand.u32 1, %s1414_s11  }
  0x15   : > { %p1505_p4 = por %p90_p0, %p39_p10  ;;  %p1244_p6 = scmp.lt.s32.totalorder %s1418_s12, 2 }
  0x16   : > { %s1211_s3 = sshll.u32 %s124_s29, 4  ;;  %s1222_s4 = sshll.u32 %s1418_s12, 4 }
  0x17   : > { %s133_s7 = scalar_lea.hbm %s1944_s0, %s1222_s4  ;;  %s128_s13 = scalar_lea.vmem [#allocation2], %s1211_s3 }
  0x18   : > { %s135_s8 = sshll.u32 %s133_s7, 4  ;;  %s137_s14 = sshll.u32 %s128_s13, 4  ;;  %s136_s8 = int_to_ptr.hbm [resolvable:$true] %s135_s8  ;;  %s138_s14 = int_to_ptr.vmem [resolvable:$true] %s137_s14 }
  0x19   : > { %p1514_p8 = pnand %p1244_p6, %p35_p2  ;;  %s125_s18 = scalar_lea.sflag [#allocation3], %s124_s29 }
  0x1a   : > { %s1318_s19 = sshra.s32 %s136_s8, 4  ;;  %s1325_s24 = scalar_lea.hbm %s1944_s0, 32  ;;  %s1319_s19 = int_to_ptr.hbm [resolvable:$true] %s1318_s19 }
  0x1b   : > { %s1320_s20 = scalar_lea.hbm %s1319_s19, 16  ;;  %p1322_p9 = pneg %p1514_p8 }
  0x1c   : > { %p1321_p7 = scmp.ne.s32.totalorder %s1319_s19, %s1320_s20  ;;  %p1326_p0 = scmp.lt.s32.totalorder %s1319_s19, %s1944_s0 }
  0x1d   : > { %p1327_p2 = scmp.lt.s32.totalorder %s1325_s24, %s1320_s20 }
  0x1e   : > { %p1323_p10 = pnand %p1322_p9, %p1321_p7 }
  0x1f   : > { %p1328_p6 = por %p1327_p2, %p1326_p0 }
  0x20   : > { %p1324_p11 = pneg %p1323_p10 }
  0x22   : > { %p1329_p5 = pnand %p1328_p6, %p1324_p11 }
  0x24   : > { %1332 = shalt.err (!%p1329_p5)
}
  0x25   : > { %1238 = dma.hbm_to_vmem [thread:$0]  (!%p1514_p8), %s136_s8, 256, %s138_s14, %s125_s18  }
  0x26   : > { %146 = sbr.rel (%p1469_p3) target bundleno = 953 (0x3b9), region = 28  ;;  %s1531_s29 = sand.u32 (!%p1469_p3), 1, %s1410_s10  }
  0x27   : > { %s1215_s4 = sshll.u32 (!%p1469_p3), %s1531_s29, 4  ;;  %s149_s5 = scalar_lea.sflag (!%p1469_p3), [#allocation3], %s1531_s29 }
  0x28   : > { %s1535_s6 = scalar_lea.vmem (!%p1469_p3), [#allocation2], %s1215_s4 }
  0x2b   : > { %1393 = dma.done.wait (%p1496_p12), %s149_s5, 256  }
  0x2c   : > { %1395 = vsyncadd (%p1496_p12), %s149_s5, 4294967040 }
  0x2d   : > { %1397 = dma.done.wait (%p40_p1), [#allocation6], 2944  }
  0x2e   : > { %1399 = vsyncadd (%p40_p1), [#allocation6], 4294964352  ;;  %v196_v0 = vld [vmem:[#allocation5 + $0x78] sm:$0xff]  ;;  %v195_v1 = vld [vmem:[#allocation5 + $0x70] sm:$0xff]  ;;  %vm204_vm0 = vcmask 457728   ;;  %s1423_s17 = smov 96  }
  0x2f   : > { %v194_v2 = vld [vmem:[#allocation5 + $0x68] sm:$0xff]  ;;  %v1545_v3 = vand.u32 4294901760, %v196_v0  ;;  %v1547_v4 = vand.u32 4294901760, %v195_v1  ;;  %v193_v6 = vld [vmem:[#allocation5 + $0x60] sm:$0xff]  ;;  %v192_v7 = vld [vmem:[#allocation5 + $0x58] sm:$0xff]  ;;  %vm776_vm1 = vcmask 261120  }
  0x30   : > { %v1549_v5 = vand.u32 4294901760, %v194_v2  ;;  %v191_v8 = vld [vmem:[#allocation5 + $0x50] sm:$0xff]  ;;  %v1551_v9 = vand.u32 4294901760, %v193_v6  ;;  %v1553_v10 = vand.u32 4294901760, %v192_v7  ;;  %v190_v12 = vld [vmem:[#allocation5 + $0x48] sm:$0xff]  ;;  %v189_v13 = vld [vmem:[#allocation5 + $0x40] sm:$0xff] }
  0x31   : > { %v1555_v11 = vand.u32 4294901760, %v191_v8  ;;  %209 = vmatpush.msra.mxu0 %v1545_v3  ;;  %v1559_v14 = vsub.f32 %v196_v0, %v1545_v3  ;;  %v1562_v15 = vsub.f32 %v195_v1, %v1547_v4  ;;  %405 = vmatpush.msra.mxu3 %v1545_v3  ;;  %v1568_v17 = vand.u32 4294901760, %v190_v12  ;;  %v188_v21 = vld [vmem:[#allocation5 + $0x38] sm:$0xff]  ;;  %v187_v26 = vld [vmem:[#allocation5 + $0x30] sm:$0xff]  ;;  %v186_v36 = vld [vmem:[#allocation5 + $0x28] sm:$0xff]  ;;  %s1424_s27 = smov 64  }
  0x32   : > { %v1566_v16 = vsub.f32 %v194_v2, %v1549_v5  ;;  %v1571_v18 = vsub.f32 %v193_v6, %v1551_v9  ;;  %v1574_v19 = vsub.f32 %v192_v7, %v1553_v10  ;;  %v1584_v25 = vand.u32 4294901760, %v189_v13  ;;  %v185_v42 = vld [vmem:[#allocation5 + $0x20] sm:$0xff]  ;;  %v184_v47 = vld [vmem:[#allocation5 + $0x18] sm:$0xff]  ;;  %v183_v54 = vld [vmem:[#allocation5 + $0x10] sm:$0xff]  ;;  %s1217_s7 = sshll.u32 %s1531_s29, 3  ;;  %s1219_s8 = sshll.u32 %s1464_s16, 3 }
  0x33   : > { %v1577_v20 = vsub.f32 %v191_v8, %v1555_v11  ;;  %211 = vmatpush.msra.mxu0 %v1547_v4  ;;  %352 = vmatpush.msra.mxu2 %v1559_v14  ;;  %v251_v22 = vand.u32 4294901760, %v1559_v14  ;;  %v257_v23 = vand.u32 4294901760, %v1562_v15  ;;  %v1590_v29 = vsub.f32 %v190_v12, %v1568_v17  ;;  %v203_v59 = vld [vmem:[#allocation5 + $0xb0] sm:$0xff]  ;;  %v182_v61 = vld [vmem:[#allocation5 + $0x8] sm:$0xff]  ;;  %v181_v2 = vld [vmem:[#allocation5] sm:$0xff]  ;;  %s1122_s15 = scalar_lea.hbm %s1946_s2, %s1219_s8  ;;  %s178_s18 = scalar_lea.vmem [#allocation7], %s1217_s7 }
  0x34   : > { %v263_v24 = vand.u32 4294901760, %v1566_v16  ;;  %407 = vmatpush.msra.mxu3 %v1547_v4  ;;  %v269_v27 = vand.u32 4294901760, %v1571_v18  ;;  %v1958_v28 = vand.u32 4294901760, %v1574_v19  ;;  %v1603_v33 = vand.u32 4294901760, %v188_v21  ;;  %v202_v6 = vld [vmem:[#allocation5 + $0xa8] sm:$0xff]  ;;  %s1124_s19 = sshll.u32 %s178_s18, 4  ;;  %s1125_s19 = int_to_ptr.vmem [resolvable:$true] %s1124_s19 }
  0x35   : > { %213 = vmatpush.msra.mxu0 %v1549_v5  ;;  %355 = vmatpush.msra.mxu2 %v1562_v15  ;;  %v252_v30 = vsub.f32 %v1559_v14, %v251_v22  ;;  %v258_v31 = vsub.f32 %v1562_v15, %v257_v23  ;;  %v1606_v34 = vand.u32 4294901760, %v187_v26  ;;  %v1954_v35 = vand.u32 4294901760, %v1577_v20  ;;  %s1126_s20 = sshll.u32 %s1122_s15, 4  ;;  %s1112_s16 = scalar_lea.sflag [#allocation4], %s1531_s29  ;;  %s1127_s20 = int_to_ptr.hbm [resolvable:$true] %s1126_s20 }
  0x36   : > { %v264_v32 = vsub.f32 %v1566_v16, %v263_v24  ;;  %409 = vmatpush.msra.mxu3 %v1549_v5  ;;  %v270_v39 = vsub.f32 %v1571_v18, %v269_v27  ;;  %v1615_v40 = vsub.f32 %v189_v13, %v1584_v25  ;;  %v276_v41 = vsub.f32 %v1574_v19, %v1958_v28  ;;  %v179_v28 = vld [vmem:[%s1535_s6] sm:$0xff]  ;;  %s1362_s21 = sshra.s32 %s1127_s20, 4  ;;  %s1368_s3 = scalar_lea.hbm %s1946_s2, 16  ;;  %s1363_s21 = int_to_ptr.hbm [resolvable:$true] %s1362_s21 }
  0x37   : > { %215 = vmatpush.msra.mxu0 %v1551_v9  ;;  %v253_v37 = vand.u32 4294901760, %v252_v30  ;;  %358 = vmatpush.msra.mxu2 %v1566_v16  ;;  %v259_v38 = vand.u32 4294901760, %v258_v31  ;;  %v1622_v44 = vand.u32 4294901760, %v186_v36  ;;  %v1953_v45 = vand.u32 4294901760, %v1590_v29  ;;  %s1364_s22 = scalar_lea.hbm %s1363_s21, 8  ;;  %p1369_p12 = scmp.lt.s32.totalorder %s1363_s21, %s1946_s2 }
  0x38   : > { %411 = vmatpush.msra.mxu3 %v1551_v9  ;;  %v265_v43 = vand.u32 4294901760, %v264_v32  ;;  %v1626_v46 = vsub.f32 %v188_v21, %v1603_v33  ;;  %v282_v48 = vsub.f32 %v1577_v20, %v1954_v35  ;;  %v271_v49 = vand.u32 4294901760, %v270_v39  ;;  %v201_v32 = vld [vmem:[#allocation5 + $0xa0] sm:$0xff]  ;;  %p1365_p1 = scmp.ne.s32.totalorder %s1363_s21, %s1364_s22  ;;  %p1370_p8 = scmp.lt.s32.totalorder %s1368_s3, %s1364_s22 }
  0x39   : > { %217 = vmatpush.msra.mxu0 %v1553_v10  ;;  %254 = vmatpush.msra.mxu1 %v253_v37  ;;  %v1634_v50 = vand.u32 4294901760, %v185_v42  ;;  %v1952_v51 = vand.u32 4294901760, %v1615_v40  ;;  %v1638_v52 = vsub.f32 %v187_v26, %v1606_v34  ;;  %v1642_v53 = vand.u32 4294901760, %v184_v47 }
  0x3a   : > { %361 = vmatpush.msra.mxu2 %v1571_v18  ;;  %413 = vmatpush.msra.mxu3 %v1553_v10  ;;  %v277_v55 = vand.u32 4294901760, %v276_v41  ;;  %v288_v56 = vsub.f32 %v1590_v29, %v1953_v45  ;;  %v1951_v57 = vand.u32 4294901760, %v1626_v46  ;;  %v1650_v58 = vsub.f32 %v186_v36, %v1622_v44  ;;  %p1366_p3 = pnand %p1365_p1, %p1500_p13  ;;  %p1371_p7 = por %p1370_p8, %p1369_p12 }
  0x3b   : > { %219 = vmatpush.msra.mxu0 %v1555_v11  ;;  %260 = vmatpush.msra.mxu1 %v259_v38  ;;  %v283_v60 = vand.u32 4294901760, %v282_v48  ;;  %v294_v62 = vsub.f32 %v1615_v40, %v1952_v51  ;;  %v1658_v63 = vand.u32 4294901760, %v183_v54  ;;  %v1950_v0 = vand.u32 4294901760, %v1638_v52 }
  0x3c   : > { %364 = vmatpush.msra.mxu2 %v1574_v19  ;;  %415 = vmatpush.msra.mxu3 %v1555_v11  ;;  %v1662_v1 = vsub.f32 %v185_v42, %v1634_v50  ;;  %v1667_v7 = vsub.f32 %v184_v47, %v1642_v53  ;;  %v1669_v8 = vand.u32 4294901760, %v203_v59  ;;  %v289_v12 = vand.u32 4294901760, %v288_v56  ;;  %p1367_p5 = pneg %p1366_p3 }
  0x3d   : > { %221 = vmatpush.msra.mxu0 %v1568_v17  ;;  %266 = vmatpush.msra.mxu1 %v265_v43  ;;  %v300_v13 = vsub.f32 %v1626_v46, %v1951_v57  ;;  %v1675_v21 = vand.u32 4294901760, %v182_v61  ;;  %v1948_v26 = vand.u32 4294901760, %v1650_v58  ;;  %v1680_v30 = vand.u32 4294901760, %v181_v2  ;;  %v200_v43 = vld [vmem:[#allocation5 + $0x98] sm:$0xff]  ;;  %v197_v57 = vld [vmem:[#allocation5 + $0x80] sm:$0xff] }
  0x3e   : > { %367 = vmatpush.msra.mxu2 %v1577_v20  ;;  %417 = vmatpush.msra.mxu3 %v1568_v17  ;;  %v1682_v31 = vand.u32 4294901760, %v202_v6  ;;  %v295_v36 = vand.u32 4294901760, %v294_v62  ;;  %v306_v37 = vsub.f32 %v1638_v52, %v1950_v0  ;;  %v1947_v38 = vand.u32 4294901760, %v1662_v1  ;;  %p1372_p9 = pnand %p1371_p7, %p1367_p5 }
  0x3f   : > { %223 = vmatpush.msra.mxu0 %v1584_v25  ;;  %272 = vmatpush.msra.mxu1 %v271_v49  ;;  %v1690_v39 = vsub.f32 %v183_v54, %v1658_v63  ;;  %v1949_v41 = vand.u32 4294901760, %v1667_v7  ;;  %v1696_v42 = vsub.f32 %v203_v59, %v1669_v8  ;;  %v301_v47 = vand.u32 4294901760, %v300_v13  ;;  %v199_v59 = vld [vmem:[#allocation5 + $0x90] sm:$0xff]  ;;  %v198_v13 = vld [vmem:[#allocation5 + $0x88] sm:$0xff] }
  0x40   : > { %370 = vmatpush.msra.mxu2 %v1590_v29  ;;  %419 = vmatpush.msra.mxu3 %v1584_v25  ;;  %v312_v48 = vsub.f32 %v1650_v58, %v1948_v26  ;;  %v1703_v49 = vsub.f32 %v182_v61, %v1675_v21  ;;  %v1705_v54 = vand.u32 4294901760, %v201_v32  ;;  %v1713_v56 = vsub.f32 %v202_v6, %v1682_v31 }
  0x41   : > { %225 = vmatpush.msra.mxu0 %v1603_v33  ;;  %278 = vmatpush.msra.mxu1 %v277_v55  ;;  %v1710_v55 = vsub.f32 %v181_v2, %v1680_v30  ;;  %v318_v61 = vsub.f32 %v1662_v1, %v1947_v38  ;;  %v1957_v62 = vand.u32 4294901760, %v1690_v39  ;;  %v324_v2 = vsub.f32 %v1667_v7, %v1949_v41 }
  0x42   : > { %373 = vmatpush.msra.mxu2 %v1615_v40  ;;  %421 = vmatpush.msra.mxu3 %v1603_v33  ;;  %v1955_v6 = vand.u32 4294901760, %v1696_v42  ;;  %v1731_v38 = vsub.f32 %v201_v32, %v1705_v54  ;;  %v1733_v26 = vand.u32 4294901760, %v199_v59  ;;  %v1959_v0 = vand.u32 4294901760, %v1713_v56 }
  0x43   : > { %227 = vmatpush.msra.mxu0 %v1606_v34  ;;  %284 = vmatpush.msra.mxu1 %v283_v60  ;;  %v307_v60 = vand.u32 4294901760, %v306_v37  ;;  %v1956_v37 = vand.u32 4294901760, %v1703_v49  ;;  %v1960_v41 = vand.u32 4294901760, %v1710_v55  ;;  %v330_v32 = vsub.f32 %v1690_v39, %v1957_v62 }
  0x44   : > { %376 = vmatpush.msra.mxu2 %v1626_v46  ;;  %423 = vmatpush.msra.mxu3 %v1606_v34  ;;  %v1746_v51 = vand.u32 4294901760, %v198_v13  ;;  %v325_v45 = vand.u32 4294901760, %v324_v2  ;;  %v593_v35 = vsub.f32 %v1696_v42, %v1955_v6  ;;  %v1761_v2 = vand.u32 4294901760, %v197_v57 }
  0x45   : > { %229 = vmatpush.msra.mxu0 %v1622_v44  ;;  %290 = vmatpush.msra.mxu1 %v289_v12  ;;  %v1720_v12 = vand.u32 4294901760, %v200_v43  ;;  %v599_v6 = vsub.f32 %v1713_v56, %v1959_v0  ;;  %vm933_vm3 = vcmask 64512  }
  0x46   : > { %379 = vmatpush.msra.mxu2 %v1638_v52  ;;  %425 = vmatpush.msra.mxu3 %v1622_v44  ;;  %v1774_v62 = vsub.f32 %v198_v13, %v1746_v51  ;;  %v594_v0 = vand.u32 4294901760, %v593_v35  ;;  %v1786_v13 = vsub.f32 %v197_v57, %v1761_v2  ;;  %v180_v57 = vld [vmem:[%s1535_s6 + $0x8] sm:$0xff] }
  0x47   : > { %231 = vmatpush.msra.mxu0 %v1634_v50  ;;  %296 = vmatpush.msra.mxu1 %v295_v36  ;;  %v313_v36 = vand.u32 4294901760, %v312_v48  ;;  %v1744_v48 = vsub.f32 %v200_v43, %v1720_v12  ;;  %v336_v43 = vsub.f32 %v1703_v49, %v1956_v37  ;;  %v342_v37 = vsub.f32 %v1710_v55, %v1960_v41 }
  0x48   : > { %382 = vmatpush.msra.mxu2 %v1650_v58  ;;  %427 = vmatpush.msra.mxu3 %v1634_v50  ;;  %v600_v14 = vand.u32 4294901760, %v599_v6  ;;  %v628_v6 = vand.u32 4294901760, %v1786_v13 }
  0x49   : > { %233 = vmatpush.msra.mxu0 %v1642_v53  ;;  %302 = vmatpush.msra.mxu1 %v301_v47  ;;  %v319_v47 = vand.u32 4294901760, %v318_v61  ;;  %v1759_v61 = vsub.f32 %v199_v59, %v1733_v26  ;;  %v610_v59 = vand.u32 4294901760, %v1744_v48  ;;  %v343_v35 = vand.u32 4294901760, %v342_v37 }
  0x4a   : > { %385 = vmatpush.msra.mxu2 %v1662_v1  ;;  %429 = vmatpush.msra.mxu3 %v1642_v53 }
  0x4b   : > { %235 = vmatpush.msra.mxu0 %v1658_v63  ;;  %308 = vmatpush.msra.mxu1 %v307_v60  ;;  %v604_v60 = vand.u32 4294901760, %v1731_v38  ;;  %v616_v41 = vand.u32 4294901760, %v1759_v61 }
  0x4c   : > { %388 = vmatpush.msra.mxu2 %v1667_v7  ;;  %431 = vmatpush.msra.mxu3 %v1658_v63 }
  0x4d   : > { %237 = vmatpush.msra.mxu0 %v1675_v21  ;;  %314 = vmatpush.msra.mxu1 %v313_v36  ;;  %v331_v36 = vand.u32 4294901760, %v330_v32  ;;  %v605_v32 = vsub.f32 %v1731_v38, %v604_v60 }
  0x4e   : > { %391 = vmatpush.msra.mxu2 %v1690_v39  ;;  %433 = vmatpush.msra.mxu3 %v1675_v21 }
  0x4f   : > { %239 = vmatpush.msra.mxu0 %v1680_v30  ;;  %320 = vmatpush.msra.mxu1 %v319_v47  ;;  %v337_v47 = vand.u32 4294901760, %v336_v43  ;;  %v622_v43 = vand.u32 4294901760, %v1774_v62  ;;  %v606_v15 = vand.u32 4294901760, %v605_v32 }
  0x50   : > { %394 = vmatpush.msra.mxu2 %v1703_v49  ;;  %435 = vmatpush.msra.mxu3 %v1680_v30 }
  0x51   : > { %446 = vmatpush.msrb.mxu0 %v251_v22  ;;  %326 = vmatpush.msra.mxu1 %v325_v45  ;;  %v1791_v22 = vand.u32 4294901760, %v179_v28  ;;  %v611_v45 = vsub.f32 %v1744_v48, %v610_v59 }
  0x52   : > { %397 = vmatpush.msra.mxu2 %v1710_v55  ;;  %595 = vmatpush.msrb.mxu3 %v594_v0  ;;  %v1966_v0 = vand.u32 4294901760, %v1574_v19  ;;  %v1968_v19 = vand.u32 4294901760, %v1590_v29  ;;  %v1970_v29 = vand.u32 4294901760, %v1626_v46 }
  0x53   : > { %450 = vmatpush.msrb.mxu0 %v257_v23  ;;  %332 = vmatpush.msra.mxu1 %v331_v36  ;;  %v617_v23 = vsub.f32 %v1759_v61, %v616_v41  ;;  %v241_v37 = vsub.f32 %v179_v28, %v1791_v22  ;;  %v206_v36 = vsel %vm204_vm0, %v180_v57, 0  ;;  %v612_v16 = vand.u32 4294901760, %v611_v45 }
  0x54   : > { %559 = vmatpush.msrb.mxu2 %v1669_v8  ;;  %601 = vmatpush.msrb.mxu3 %v600_v14  ;;  %v1820_v28 = vand.u32 4294901760, %v206_v36  ;;  %v1971_v45 = vand.u32 4294901760, %v1638_v52  ;;  %v1975_v52 = vand.u32 4294901760, %v1690_v39 }
  0x55   : > { %454 = vmatpush.msrb.mxu0 %v263_v24  ;;  %338 = vmatpush.msra.mxu1 %v337_v47  ;;  %v623_v24 = vsub.f32 %v1774_v62, %v622_v43  ;;  %v618_v18 = vand.u32 4294901760, %v617_v23  ;;  %v1967_v47 = vand.u32 4294901760, %v1577_v20  ;;  %v242_v32 = vand.u32 4294901760, %v241_v37 }
  0x56   : > { %561 = vmatpush.msrb.mxu2 %v1682_v31  ;;  %607 = vmatpush.msrb.mxu3 %v606_v15  ;;  %v1969_v20 = vand.u32 4294901760, %v1615_v40 }
  0x57   : > { %458 = vmatpush.msrb.mxu0 %v269_v27  ;;  %344 = vmatpush.msra.mxu1 %v343_v35  ;;  %v629_v27 = vsub.f32 %v1786_v13, %v628_v6  ;;  %v573_v35 = vsub.f32 %v206_v36, %v1820_v28 }
  0x58   : > { %563 = vmatpush.msrb.mxu2 %v1705_v54  ;;  %613 = vmatpush.msrb.mxu3 %v612_v16 }
  0x59   : > { %462 = vmatpush.msrb.mxu0 %v1966_v0  ;;  %513 = vmatpush.msrb.mxu1 %v1545_v3  ;;  %v624_v3 = vand.u32 4294901760, %v623_v24  ;;  %v630_v14 = vand.u32 4294901760, %v629_v27 }
  0x5a   : > { %565 = vmatpush.msrb.mxu2 %v1720_v12  ;;  %619 = vmatpush.msrb.mxu3 %v618_v18  ;;  %v927_v18 = vlaneseq }
  0x5b   : > { %466 = vmatpush.msrb.mxu0 %v1967_v47  ;;  %515 = vmatpush.msrb.mxu1 %v1547_v4  ;;  %v243_v4 = vsub.f32 %v241_v37, %v242_v32 }
  0x5c   : > { %567 = vmatpush.msrb.mxu2 %v1733_v26  ;;  %625 = vmatpush.msrb.mxu3 %v624_v3  ;;  %v930_v3 = vand.u32 127, %v927_v18 }
  0x5d   : > { %470 = vmatpush.msrb.mxu0 %v1968_v19  ;;  %517 = vmatpush.msrb.mxu1 %v1549_v5  ;;  %v574_v5 = vand.u32 4294901760, %v573_v35  ;;  %v244_v40 = vand.u32 4294901760, %v243_v4 }
  0x5e   : > { %569 = vmatpush.msrb.mxu2 %v1746_v51  ;;  %631 = vmatpush.msrb.mxu3 %v630_v14 }
  0x5f   : > { %474 = vmatpush.msrb.mxu0 %v1969_v20  ;;  %519 = vmatpush.msrb.mxu1 %v1551_v9  ;;  %v1972_v9 = vand.u32 4294901760, %v1650_v58 }
  0x60   : > { %571 = vmatpush.msrb.mxu2 %v1761_v2  ;;  %439 = vmatmul.f32.vlgmr.msra.gmra.mxu3 %v242_v32  ;;  %v928_v32 = vshrl.u32 %v927_v18, 7 }
  0x61   : > { %478 = vmatpush.msrb.mxu0 %v1970_v29  ;;  %521 = vmatpush.msrb.mxu1 %v1553_v10  ;;  %v575_v10 = vsub.f32 %v573_v35, %v574_v5 }
  0x62   : > { %400 = vmatmul.f32.vlgmr.msra.gmra.mxu2 %v241_v37  ;;  %683 = vmatpush.msra.mxu3 %v1669_v8  ;;  %vm931_vm2 = vcmp.le.s32.totalorder %v930_v3, %v928_v32 }
  0x63   : > { %648 = vmatpush.msra.mxu2 %v1696_v42  ;;  %482 = vmatpush.msrb.mxu0 %v1971_v45  ;;  %v576_v46 = vand.u32 4294901760, %v575_v10 }
  0x64   : > { %523 = vmatpush.msrb.mxu1 %v1555_v11  ;;  %245 = vmatmul.f32.vlgmr.msra.gmra.mxu0 %v244_v40  ;;  %v1973_v11 = vand.u32 4294901760, %v1662_v1 }
  0x65   : > { %651 = vmatpush.msra.mxu2 %v1713_v56  ;;  %486 = vmatpush.msrb.mxu0 %v1972_v9 }
  0x66   : > { %525 = vmatpush.msrb.mxu1 %v1568_v17  ;;  %685 = vmatpush.msra.mxu3 %v1682_v31  ;;  %v1974_v17 = vand.u32 4294901760, %v1667_v7 }
  0x67   : > { %346 = vmatmul.f32.vlgmr.msra.gmra.mxu1 %v1791_v22  ;;  %654 = vmatpush.msra.mxu2 %v1731_v38 }
  0x68   : > { %490 = vmatpush.msrb.mxu0 %v1973_v11  ;;  %527 = vmatpush.msrb.mxu1 %v1584_v25  ;;  %v1976_v25 = vand.u32 4294901760, %v1703_v49 }
  0x69   : > { %657 = vmatpush.msra.mxu2 %v1744_v48  ;;  %687 = vmatpush.msra.mxu3 %v1705_v54 }
  0x6a   : > { %494 = vmatpush.msrb.mxu0 %v1974_v17  ;;  %529 = vmatpush.msrb.mxu1 %v1603_v33  ;;  %v1977_v33 = vand.u32 4294901760, %v1710_v55 }
  0x6b   : > { %660 = vmatpush.msra.mxu2 %v1759_v61  ;;  %689 = vmatpush.msra.mxu3 %v1720_v12 }
  0x6c   : > { %498 = vmatpush.msrb.mxu0 %v1975_v52  ;;  %531 = vmatpush.msrb.mxu1 %v1606_v34  ;;  %v1978_v34 = vand.u32 4294901760, %v1696_v42 }
  0x6d   : > { %577 = vmatmul.f32.vlgmr.msrb.gmra.mxu2 %v576_v46  ;;  %691 = vmatpush.msra.mxu3 %v1733_v26 }
  0x6e   : > { %663 = vmatpush.msra.mxu2 %v1774_v62  ;;  %502 = vmatpush.msrb.mxu0 %v1976_v25 }
  0x6f   : > { %533 = vmatpush.msrb.mxu1 %v1622_v44  ;;  %633 = vmatmul.f32.vlgmr.msrb.gmra.mxu3 %v1820_v28  ;;  %v1979_v44 = vand.u32 4294901760, %v1713_v56 }
  0x70   : > { %666 = vmatpush.msra.mxu2 %v1786_v13  ;;  %693 = vmatpush.msra.mxu3 %v1746_v51 }
  0x71   : > { %506 = vmatpush.msrb.mxu0 %v1977_v33  ;;  %535 = vmatpush.msrb.mxu1 %v1634_v50 }
  0x72   : > { %715 = vmatpush.msrb.mxu2 %v1978_v34  ;;  %508 = vmatmul.f32.vlgmr.msrb.gmra.mxu0 %v1791_v22 }
  0x73   : > { %695 = vmatpush.msra.mxu3 %v1761_v2  ;;  %537 = vmatpush.msrb.mxu1 %v1642_v53 }
  0x74   : > { %719 = vmatpush.msrb.mxu2 %v1979_v44 }
  0x75   : > { %755 = vmatpush.msrb.mxu3 %v1669_v8  ;;  %539 = vmatpush.msrb.mxu1 %v1658_v63 }
  0x76   : > { %669 = vmatmul.f32.vlgmr.msra.gmra.mxu2 %v573_v35 }
  0x77   : > { %723 = vmatpush.msrb.mxu2 %v604_v60  ;;  %757 = vmatpush.msrb.mxu3 %v1682_v31 }
  0x78   : > { %541 = vmatpush.msrb.mxu1 %v1675_v21  ;;  %699 = vmatmul.f32.vlgmr.msra.gmra.mxu3 %v574_v5 }
  0x79   : > { %727 = vmatpush.msrb.mxu2 %v610_v59  ;;  %759 = vmatpush.msrb.mxu3 %v1705_v54 }
  0x7a   : > { %543 = vmatpush.msrb.mxu1 %v1680_v30 }
  0x7b   : > { %731 = vmatpush.msrb.mxu2 %v616_v41  ;;  %761 = vmatpush.msrb.mxu3 %v1720_v12 }
  0x7c   : > { %545 = vmatmul.f32.vlgmr.msrb.gmra.mxu1 %v1791_v22 }
  0x7d   : > { %735 = vmatpush.msrb.mxu2 %v622_v43  ;;  %763 = vmatpush.msrb.mxu3 %v1733_v26 }
  0x7f   : > { %739 = vmatpush.msrb.mxu2 %v628_v6  ;;  %765 = vmatpush.msrb.mxu3 %v1746_v51 }
  0x80   : > { %741 = vmatmul.f32.vlgmr.msrb.gmra.mxu2 %v1820_v28 }
  0x81   : > { %767 = vmatpush.msrb.mxu3 %v1761_v2 }
  0x82   : > { %769 = vmatmul.f32.vlgmr.msrb.gmra.mxu3 %v1820_v28 }
  0xe1   : > { %v246_v53 = vpop.f32.mrf.mxu0 }
  0xe3   : > { %v440_v63 = vpop.f32.mrf.mxu3 }
  0xe4   : > { %v347_v58 = vpop.f32.mrf.mxu1 }
  0xe5   : > { %v401_v50 = vpop.f32.mrf.mxu2  ;;  %v348_v1 = vadd.f32 %v347_v58, %v246_v53 }
  0xe7   : > { %v402_v8 = vadd.f32 %v401_v50, %v348_v1 }
  0xe9   : > { %v441_v30 = vadd.f32 %v440_v63, %v402_v8 }
  0xef   : > { %v509_v26 = vpop.f32.mrf.mxu0 }
  0xf0   : > { %v578_v7 = vpop.f32.mrf.mxu2  ;;  %v510_v31 = vadd.f32 %v509_v26, %v441_v30 }
  0xf2   : > { %v634_v21 = vpop.f32.mrf.mxu3 }
  0xf9   : > { %v546_v38 = vpop.f32.mrf.mxu1  ;;  %v670_v39 = vpop.f32.mrf.mxu2 }
  0xfa   : > { %v547_v51 = vadd.f32 %v546_v38, %v510_v31 }
  0xfb   : > { %v700_v41 = vpop.f32.mrf.mxu3 }
  0xfc   : > { %v579_v42 = vadd.f32 %v578_v7, %v547_v51 }
  0xfe   : > { %v635_v49 = vadd.f32 %v634_v21, %v579_v42 }
 0x100   : > { %v671_v54 = vadd.f32 %v670_v39, %v635_v49 }
 0x102   : > { %v701_v55 = vadd.f32 %v700_v41, %v671_v54 }
 0x103   : > { %v742_v56 = vpop.f32.mrf.mxu2 }
 0x104   : > { %v743_v62 = vadd.f32 %v742_v56, %v701_v55 }
 0x105   : > { %v770_v12 = vpop.f32.mrf.mxu3 }
 0x106   : > { %v771_v48 = vadd.f32 %v770_v12, %v743_v62 }
 0x108   : > { %774 = vrot.lane.b32.xlu0 %v771_v48, %s1423_s17  ;;  %v777_v60 = vsel %vm776_vm1, %v771_v48, 0 }
 0x109   : > { %v798_v61 = vand.u32 4294901760, %v777_v60 }
 0x10b   : > { %v799_v2 = vsub.f32 %v777_v60, %v798_v61 }
 0x10d   : > { %v800_v59 = vand.u32 4294901760, %v799_v2 }
 0x10f   : > { %v801_v43 = vsub.f32 %v799_v2, %v800_v59 }
 0x111   : > { %v802_v23 = vand.u32 4294901760, %v801_v43 }
 0x17a   : > { %v775_v13 = vpop.permute.xlu0 %774 }
 0x17b   : > { %v779_v22 = vsel %vm776_vm1, %v775_v13, 0 }
 0x17c   : > { %v796_v57 = vand.u32 4294901760, %v779_v22 }
 0x17e   : > { %v823_v15 = vsub.f32 %v779_v22, %v796_v57  ;;  %797 = vmatpush.xpose.msra.mxu0 %v796_v57  ;;  %921 = vmatpush.xpose.msra.mxu3 %v796_v57 }
 0x180   : > { %v824_v6 = vand.u32 4294901760, %v823_v15 }
 0x181   : > { %803 = vmatmul.f32.vlgmr.msra.gmra.mxu0 %v802_v23  ;;  %923 = vmatmul.f32.vlgmr.msra.gmra.mxu3 %v798_v61 }
 0x182   : > { %850 = vmatpush.xpose.msrb.mxu0 %v823_v15  ;;  %v825_v37 = vsub.f32 %v823_v15, %v824_v6  ;;  %899 = vmatpush.xpose.msra.mxu2 %v824_v6 }
 0x184   : > { %v826_v36 = vand.u32 4294901760, %v825_v37 }
 0x185   : > { %901 = vmatmul.f32.vlgmr.msra.gmra.mxu2 %v798_v61 }
 0x186   : > { %827 = vmatpush.xpose.msra.mxu1 %v826_v36 }
 0x189   : > { %829 = vmatmul.f32.vlgmr.msra.gmra.mxu1 %v798_v61  ;;  %853 = vmatmul.f32.vlgmr.msrb.gmra.mxu0 %v799_v2 }
 0x18a   : > { %873 = vmatpush.xpose.msrb.mxu1 %v796_v57 }
 0x191   : > { %877 = vmatmul.f32.vlgmr.msrb.gmra.mxu1 %v800_v59 }
 0x1fe   : > { %v804_v16 = vpop.f32.mrf.mxu0 }
 0x204   : > { %v924_v20 = vpop.f32.mrf.mxu3 }
 0x206   : > { %v830_v24 = vpop.f32.mrf.mxu1  ;;  %v854_v27 = vpop.f32.mrf.mxu0 }
 0x207   : > { %v831_v0 = vadd.f32 %v830_v24, %v804_v16 }
 0x208   : > { %v902_v14 = vpop.f32.mrf.mxu2 }
 0x209   : > { %v855_v28 = vadd.f32 %v854_v27, %v831_v0 }
 0x20e   : > { %v878_v47 = vpop.f32.mrf.mxu1 }
 0x20f   : > { %v879_v19 = vadd.f32 %v878_v47, %v855_v28 }
 0x211   : > { %v903_v35 = vadd.f32 %v902_v14, %v879_v19 }
 0x213   : > { %v925_v4 = vadd.f32 %v924_v20, %v903_v35 }
 0x215   : > { %v932_v29 = vsel %vm931_vm2, %v925_v4, -inf }
 0x216   : > { %v934_v5 = vsel %vm933_vm3, %v932_v29, -inf }
 0x217   : > { %935 = vmax.xlane.f32.xlu0 %v934_v5 }
 0x28a   : > { %v936_v45 = vpop.xlane.xlu0 %935 }
 0x28b   : > { %v937_v40 = vsub.f32 %v932_v29, %v936_v45 }
 0x28d   : > { %v938_v9 = vmul.f32 1.442695, %v937_v40 }
 0x28f   : > { %1284 = vpow2.f32 %v938_v9 }
 0x295   : > { %v1285_v10 = vpop.eup %1284 }
 0x296   : > { %v940_v11 = vsel %vm933_vm3, %v1285_v10, 0.0 }
 0x297   : > { %941 = vadd.xlane.f32.xlu1 %v940_v11 }
 0x2b0   : > { %958 = vrot.lane.b32.xlu1 %v771_v48, %s1424_s27 }
 0x30a   : > { %v942_v46 = vpop.xlane.xlu1 %941 }
 0x30b   : > { %1286 = vrcp.f32 %v942_v46  ;;  %v954_v33 = vand.u32 2147483648, %v942_v46  ;;  %v952_v44 = vand.u32 2147483647, %v942_v46  ;;  %vm948_vm5 = vweird.f32 %v942_v46 }
 0x30d   : > { %v955_v53 = vor.u32 1.1754944e-38, %v954_v33  ;;  %vm953_vm7 = vcmp.eq.f32.partialorder %v952_v44, 8.507059e+37 }
 0x311   : > { %v1287_v17 = vpop.eup %1286 }
 0x312   : > { %v944_v52 = vmul.f32 %v1287_v17, %v942_v46  ;;  %vm949_vm4 = vweird.f32 %v1287_v17 }
 0x313   : > { %vm950_vm6 = vmor %vm948_vm5, %vm949_vm4 }
 0x314   : > { %v945_v25 = vsub.f32 1.0, %v944_v52 }
 0x316   : > { %v946_v34 = vmul.f32 %v1287_v17, %v945_v25 }
 0x318   : > { %v947_v50 = vadd.f32 %v1287_v17, %v946_v34 }
 0x31a   : > { %v951_v58 = vsel %vm950_vm6, %v1287_v17, %v947_v50 }
 0x31b   : > { %v956_v63 = vsel %vm953_vm7, %v955_v53, %v951_v58 }
 0x31c   : > { %v957_v1 = vmul.f32 %v1285_v10, %v956_v63 }
 0x31e   : > { %v962_v7 = vsel %vm933_vm3, %v957_v1, 0 }
 0x31f   : > { %v981_v8 = vand.u32 4294901760, %v962_v7 }
 0x321   : > { %v982_v21 = vsub.f32 %v962_v7, %v981_v8 }
 0x322   : > { %v959_v26 = vpop.permute.xlu1 %958 }
 0x323   : > { %v979_v30 = vand.u32 4294901760, %v959_v26  ;;  %v983_v31 = vand.u32 4294901760, %v982_v21 }
 0x325   : > { %v1006_v38 = vsub.f32 %v959_v26, %v979_v30  ;;  %980 = vmatpush.msra.mxu0 %v979_v30  ;;  %1056 = vmatpush.msrb.mxu3 %v979_v30  ;;  %v984_v39 = vsub.f32 %v982_v21, %v983_v31 }
 0x326   : > { %1060 = vmatmul.f32.vlgmr.msrb.gmra.mxu3 %v983_v31 }
 0x327   : > { %v1007_v51 = vand.u32 4294901760, %v1006_v38  ;;  %1033 = vmatpush.msrb.mxu2 %v1006_v38  ;;  %v985_v41 = vand.u32 4294901760, %v984_v39 }
 0x328   : > { %1036 = vmatmul.f32.vlgmr.msrb.gmra.mxu2 %v982_v21 }
 0x329   : > { %v1008_v42 = vsub.f32 %v1006_v38, %v1007_v51  ;;  %986 = vmatmul.f32.vlgmr.msra.gmra.mxu0 %v985_v41 }
 0x32a   : > { %1082 = vmatpush.msrb.mxu0 %v1007_v51 }
 0x32b   : > { %v1009_v49 = vand.u32 4294901760, %v1008_v42 }
 0x32d   : > { %1010 = vmatpush.msra.mxu1 %v1009_v49 }
 0x32e   : > { %1012 = vmatmul.f32.vlgmr.msra.gmra.mxu1 %v981_v8 }
 0x32f   : > { %1104 = vmatpush.msrb.mxu1 %v979_v30 }
 0x331   : > { %1084 = vmatmul.f32.vlgmr.msrb.gmra.mxu0 %v981_v8 }
 0x336   : > { %1106 = vmatmul.f32.vlgmr.msrb.gmra.mxu1 %v981_v8 }
 0x3a6   : > { %v987_v54 = vpop.f32.mrf.mxu0 }
 0x3a9   : > { %v1061_v48 = vpop.f32.mrf.mxu3 }
 0x3ab   : > { %v1013_v55 = vpop.f32.mrf.mxu1  ;;  %v1037_v62 = vpop.f32.mrf.mxu2 }
 0x3ac   : > { %v1014_v56 = vadd.f32 %v1013_v55, %v987_v54 }
 0x3ae   : > { %v1038_v12 = vadd.f32 %v1037_v62, %v1014_v56  ;;  %v1085_v61 = vpop.f32.mrf.mxu0 }
 0x3b0   : > { %v1062_v60 = vadd.f32 %v1061_v48, %v1038_v12 }
 0x3b2   : > { %v1086_v2 = vadd.f32 %v1085_v61, %v1062_v60 }
 0x3b3   : > { %v1107_v59 = vpop.f32.mrf.mxu1 }
 0x3b4   : > { %v1108_v13 = vadd.f32 %v1107_v59, %v1086_v2 }
 0x3b6   : > { %1110 = vst.msk [vmem:[%s178_s18] sm:$0xff] %vm776_vm1, %v1108_v13 }
 0x3b7   : > { %1375 = shalt.err (!%p1372_p9)
}
 0x3b8   : > { %1229 = dma.vmem_to_hbm [thread:$0]  (%p1500_p13), %s1125_s19, 128, %s1127_s20, %s1112_s16  }
 0x3b9 PF: > { %s1138_s29 = sand.u32 1, %s1406_s9   ;;  %p1980_p10 = scmp.ge.s32.totalorder %s1418_s12, 2 }
 0x3ba   : > { %s1139_s6 = scalar_lea.sflag [#allocation4], %s1138_s29 }
 0x3bb   : > { %p1240_p11 = pnand %p1980_p10, %p1505_p4 }
 0x3bd   : > { %p1241_p0 = pneg %p1240_p11 }
 0x3bf   : > { %1401 = dma.done.wait (%p1241_p0), %s1139_s6, 128  }
 0x3c0   : > { %1403 = vsyncadd (%p1241_p0), %s1139_s6, 4294967168  ;;  %p16_p2 = scmp.ge.s32.totalorder %s1480_s23, 4   ;;  %s1981_s9 = smov %s1410_s10 }
 0x3c1   : > { %s1982_s10 = smov %s1414_s11  ;;  %s1983_s11 = smov %s1492_s26 }
 0x3c2   : > { %s1984_s12 = smov %s1480_s23  ;;  %18 = sbr.rel (!%p16_p2) target bundleno = 6 (0x6), region = 77 }
 0x3c7   :  { %1145 = vsyncpa [#allocation3], 1 }
 0x3c8   :  { %1147 = vsyncpa [#allocation3 + $0x1], 1 }
 0x3c9   :  { %1148 = vsyncpa [#allocation6], 1 }
 0x3ca   :  { %1149 = vsyncpa [#allocation4], 1 }
 0x3cb   :  { %1151 = vsyncpa [#allocation4 + $0x1], 1 }

</bundles_post_ra>
